<compile_context>
chip_gen: v7x
topology: tpu7x:2x2x1
jax: 0.10.0
libtpu: 0.0.40
codegen_flags: <defaults>
</compile_context>

<pallas_src>
import functools

import jax
import jax.numpy as jnp
from jax.experimental import pallas as pl
from jax.experimental.pallas import tpu as pltpu

LANE = 128
SUBLANE = 8


def _round_up(n, m):
    return (n + m - 1) // m * m


def mlp_kernel(x_ref, w1_ref, b1_ref, w2_ref, b2_ref, w3_ref, b3_ref, o_ref):
    # fc1 + ReLU: MXU matmul, f32 accumulation; bias-add / ReLU on the VPU in f32.
    h1 = jnp.dot(x_ref[...], w1_ref[...], preferred_element_type=jnp.float32)
    h1 = jnp.maximum(h1 + b1_ref[...], 0.0)
    # fc2 + ReLU (cast activations back to operand dtype so bf16 stays on the MXU).
    h2 = jnp.dot(h1.astype(w2_ref.dtype), w2_ref[...],
                 preferred_element_type=jnp.float32)
    h2 = jnp.maximum(h2 + b2_ref[...], 0.0)
    # fc3 (out-features padded to a full 128-lane width; no activation).
    out = jnp.dot(h2.astype(w3_ref.dtype), w3_ref[...],
                  preferred_element_type=jnp.float32)
    o_ref[...] = (out + b3_ref[...]).astype(o_ref.dtype)


def _choose_tb(batch):
    """Batch-tile heuristic: one grid step for small batches (no per-step
    overhead); for large batches keep >=2 grid steps (dual-TC on v7x) and cap
    the tile at 512 rows (well under the scoped-VMEM default everywhere)."""
    if batch <= 256:
        return _round_up(batch, SUBLANE)
    return min(512, _round_up(pl.cdiv(batch, 2), SUBLANE))


@functools.partial(jax.jit, static_argnames=("tb", "use_bf16"))
def mlp_forward(x, w1, b1, w2, b2, w3, b3, *, tb=None, use_bf16=False):
    B, state_dim = x.shape
    hidden_dim = w1.shape[1]
    action_dim = w3.shape[1]

    if tb is None:
        tb = _choose_tb(B)
    tb = max(SUBLANE, _round_up(tb, SUBLANE))
    grid = pl.cdiv(B, tb)
    b_pad = grid * tb

    # Lane-dense output: pad fc3 out-features to 128 lanes so output stores are
    # unmasked full-width vst (the biggest wrapper-visible lever measured).
    n_out = _round_up(action_dim, LANE)

    compute_dtype = jnp.bfloat16 if use_bf16 else x.dtype
    itemsize = jnp.dtype(compute_dtype).itemsize

    xp = x if b_pad == B else jnp.pad(x, ((0, b_pad - B), (0, 0)))
    xp = xp.astype(compute_dtype)
    w1c = w1.astype(compute_dtype)
    w2c = w2.astype(compute_dtype)
    w3p = jnp.pad(w3, ((0, 0), (0, n_out - action_dim))).astype(compute_dtype)
    b1c = b1.astype(jnp.float32)
    b2c = b2.astype(jnp.float32)
    b3p = jnp.pad(b3, ((0, 0), (0, n_out - action_dim))).astype(jnp.float32)

    flops = 2 * b_pad * (state_dim * hidden_dim
                         + hidden_dim * hidden_dim
                         + hidden_dim * n_out)
    bytes_accessed = (
        b_pad * state_dim * itemsize                                   # x
        + (state_dim * hidden_dim + hidden_dim * hidden_dim
           + hidden_dim * n_out) * itemsize                            # weights
        + (2 * hidden_dim + n_out) * 4                                 # biases (f32)
        + b_pad * n_out * 4                                            # padded output
    )
    cost = pl.CostEstimate(flops=flops, transcendentals=0,
                           bytes_accessed=bytes_accessed)

    # Weights/biases total ~70 KB, so default double-buffering costs ~140 KB of
    # VMEM (negligible); constant index_maps mean they are fetched once and stay
    # resident across grid steps.
    out_padded = pl.pallas_call(
        mlp_kernel,
        out_shape=jax.ShapeDtypeStruct((b_pad, n_out), jnp.float32),
        grid_spec=pltpu.PrefetchScalarGridSpec(
            num_scalar_prefetch=0,
            grid=(grid,),
            in_specs=[
                pl.BlockSpec((tb, state_dim), lambda i: (i, 0)),
                pl.BlockSpec((state_dim, hidden_dim), lambda i: (0, 0)),
                pl.BlockSpec((1, hidden_dim), lambda i: (0, 0)),
                pl.BlockSpec((hidden_dim, hidden_dim), lambda i: (0, 0)),
                pl.BlockSpec((1, hidden_dim), lambda i: (0, 0)),
                pl.BlockSpec((hidden_dim, n_out), lambda i: (0, 0)),
                pl.BlockSpec((1, n_out), lambda i: (0, 0)),
            ],
            out_specs=pl.BlockSpec((tb, n_out), lambda i: (i, 0)),
        ),
        compiler_params=pltpu.CompilerParams(
            dimension_semantics=("parallel",),
        ),
        cost_estimate=cost,
    )(xp, w1c, b1c, w2c, b2c, w3p, b3p)

    return out_padded[:B, :action_dim]


def init_linear(key, in_features, out_features, dtype=jnp.float32):
    """Deterministic PyTorch-style Linear init (uniform +/- 1/sqrt(fan_in))."""
    kw, kb = jax.random.split(key)
    bound = 1.0 / jnp.sqrt(jnp.float32(in_features))
    w = jax.random.uniform(kw, (in_features, out_features), dtype, -bound, bound)
    b = jax.random.uniform(kb, (1, out_features), dtype, -bound, bound)
    return w, b


def mlp_reference(x, w1, b1, w2, b2, w3, b3):
    h1 = jax.nn.relu(x @ w1 + b1)
    h2 = jax.nn.relu(h1 @ w2 + b2)
    return h2 @ w3 + b3


if __name__ == "__main__":
    state_dim = 4       # environment state dimension
    action_dim = 2      # action dimension
    hidden_dim = 128    # default hidden_dim in the module

    key = jax.random.PRNGKey(0)
    kx1, kx2, k1, k2, k3 = jax.random.split(key, 5)

    w1, b1 = init_linear(k1, state_dim, hidden_dim)
    w2, b2 = init_linear(k2, hidden_dim, hidden_dim)
    w3, b3 = init_linear(k3, hidden_dim, action_dim)

    # Typical small DQN replay batch: single grid step, whole batch in one tile.
    x = jax.random.normal(kx1, (64, state_dim), jnp.float32)
    out = jax.block_until_ready(mlp_forward(x, w1, b1, w2, b2, w3, b3))
    ref = mlp_reference(x, w1, b1, w2, b2, w3, b3)
    assert out.shape == (64, action_dim)
    assert jnp.allclose(out, ref, atol=1e-5, rtol=1e-5)

    # Explicit tile -> 2 grid steps: exercises the pipelined multi-step path.
    out_tiled = jax.block_until_ready(
        mlp_forward(x, w1, b1, w2, b2, w3, b3, tb=32))
    assert out_tiled.shape == (64, action_dim)
    assert jnp.allclose(out_tiled, ref, atol=1e-5, rtol=1e-5)

    # Small, non-multiple-of-8 batch: exercises the batch-padding path.
    x_small = jax.random.normal(kx2, (6, state_dim), jnp.float32)
    out_small = jax.block_until_ready(mlp_forward(x_small, w1, b1, w2, b2, w3, b3))
    ref_small = mlp_reference(x_small, w1, b1, w2, b2, w3, b3)
    assert out_small.shape == (6, action_dim)
    assert jnp.allclose(out_small, ref_small, atol=1e-5, rtol=1e-5)

    # bf16 operand path (v6e/v7x MXU-friendly); accumulation/elementwise stay f32.
    out_bf16 = jax.block_until_ready(
        mlp_forward(x, w1, b1, w2, b2, w3, b3, use_bf16=True))
    assert out_bf16.shape == (64, action_dim)
    assert jnp.allclose(out_bf16, ref, atol=5e-2, rtol=5e-2)

    print("KERNEL_OK")
</pallas_src>

<mosaic_0001>
module attributes {stable_mosaic.version = 11 : i64} {
  func.func @mlp_kernel(%arg0: i32, %arg1: memref<64x4xf32, #tpu.memory_space<vmem>>, %arg2: memref<4x128xf32, #tpu.memory_space<vmem>>, %arg3: memref<1x128xf32, #tpu.memory_space<vmem>>, %arg4: memref<128x128xf32, #tpu.memory_space<vmem>>, %arg5: memref<1x128xf32, #tpu.memory_space<vmem>>, %arg6: memref<128x128xf32, #tpu.memory_space<vmem>>, %arg7: memref<1x128xf32, #tpu.memory_space<vmem>>, %arg8: memref<64x128xf32, #tpu.memory_space<vmem>>) attributes {dimension_semantics = [#tpu.dimension_semantics<parallel>], iteration_bounds = array<i64: 1>, scalar_prefetch = 0 : i64, scratch_operands = 0 : i64, tpu.core_type = #tpu.core_type<tc>, window_params = [{transform_indices = @transform_0, window_bounds = array<i64: 64, 4>}, {pipeline_mode = #tpu.pipeline_mode<synchronous>, transform_indices = @transform_1, window_bounds = array<i64: 4, 128>}, {pipeline_mode = #tpu.pipeline_mode<synchronous>, transform_indices = @transform_2, window_bounds = array<i64: 1, 128>}, {pipeline_mode = #tpu.pipeline_mode<synchronous>, transform_indices = @transform_3, window_bounds = array<i64: 128, 128>}, {pipeline_mode = #tpu.pipeline_mode<synchronous>, transform_indices = @transform_4, window_bounds = array<i64: 1, 128>}, {pipeline_mode = #tpu.pipeline_mode<synchronous>, transform_indices = @transform_5, window_bounds = array<i64: 128, 128>}, {pipeline_mode = #tpu.pipeline_mode<synchronous>, transform_indices = @transform_6, window_bounds = array<i64: 1, 128>}, {transform_indices = @transform_7, window_bounds = array<i64: 64, 128>}]} {
    %c0 = arith.constant 0 : index
    %c0_0 = arith.constant 0 : index
    %0 = vector.load %arg1[%c0, %c0_0] : memref<64x4xf32, #tpu.memory_space<vmem>>, vector<64x4xf32>
    %c0_1 = arith.constant 0 : index
    %c0_2 = arith.constant 0 : index
    %1 = vector.load %arg2[%c0_1, %c0_2] : memref<4x128xf32, #tpu.memory_space<vmem>>, vector<4x128xf32>
    %cst = arith.constant dense<0.000000e+00> : vector<64x128xf32>
    %2 = tpu.matmul %0, %1, %cst {dimension_numbers = #tpu.dot_dimension_numbers<[1], [0], [0], [1], [0, 0, 1, 1], [], []>} : vector<64x4xf32>, vector<4x128xf32>, vector<64x128xf32> -> vector<64x128xf32>
    %c0_3 = arith.constant 0 : index
    %c0_4 = arith.constant 0 : index
    %3 = vector.load %arg3[%c0_3, %c0_4] : memref<1x128xf32, #tpu.memory_space<vmem>>, vector<1x128xf32>
    %4 = vector.broadcast %3 : vector<1x128xf32> to vector<64x128xf32>
    %5 = arith.addf %2, %4 : vector<64x128xf32>
    %cst_5 = arith.constant 0.000000e+00 : f32
    %6 = vector.broadcast %cst_5 : f32 to vector<64x128xf32>
    %7 = arith.maximumf %5, %6 : vector<64x128xf32>
    %c0_6 = arith.constant 0 : index
    %c0_7 = arith.constant 0 : index
    %8 = vector.load %arg4[%c0_6, %c0_7] : memref<128x128xf32, #tpu.memory_space<vmem>>, vector<128x128xf32>
    %cst_8 = arith.constant dense<0.000000e+00> : vector<64x128xf32>
    %9 = tpu.matmul %7, %8, %cst_8 {dimension_numbers = #tpu.dot_dimension_numbers<[1], [0], [0], [1], [0, 0, 1, 1], [], []>} : vector<64x128xf32>, vector<128x128xf32>, vector<64x128xf32> -> vector<64x128xf32>
    %c0_9 = arith.constant 0 : index
    %c0_10 = arith.constant 0 : index
    %10 = vector.load %arg5[%c0_9, %c0_10] : memref<1x128xf32, #tpu.memory_space<vmem>>, vector<1x128xf32>
    %11 = vector.broadcast %10 : vector<1x128xf32> to vector<64x128xf32>
    %12 = arith.addf %9, %11 : vector<64x128xf32>
    %cst_11 = arith.constant 0.000000e+00 : f32
    %13 = vector.broadcast %cst_11 : f32 to vector<64x128xf32>
    %14 = arith.maximumf %12, %13 : vector<64x128xf32>
    %c0_12 = arith.constant 0 : index
    %c0_13 = arith.constant 0 : index
    %15 = vector.load %arg6[%c0_12, %c0_13] : memref<128x128xf32, #tpu.memory_space<vmem>>, vector<128x128xf32>
    %cst_14 = arith.constant dense<0.000000e+00> : vector<64x128xf32>
    %16 = tpu.matmul %14, %15, %cst_14 {dimension_numbers = #tpu.dot_dimension_numbers<[1], [0], [0], [1], [0, 0, 1, 1], [], []>} : vector<64x128xf32>, vector<128x128xf32>, vector<64x128xf32> -> vector<64x128xf32>
    %c0_15 = arith.constant 0 : index
    %c0_16 = arith.constant 0 : index
    %17 = vector.load %arg7[%c0_15, %c0_16] : memref<1x128xf32, #tpu.memory_space<vmem>>, vector<1x128xf32>
    %18 = vector.broadcast %17 : vector<1x128xf32> to vector<64x128xf32>
    %19 = arith.addf %16, %18 : vector<64x128xf32>
    %c0_17 = arith.constant 0 : index
    %c0_18 = arith.constant 0 : index
    %20 = vector.load %arg8[%c0_17, %c0_18] : memref<64x128xf32, #tpu.memory_space<vmem>>, vector<64x128xf32>
    tpu.vector_store %arg8[%c0_17, %c0_18], %19 {strides = array<i32>} : memref<64x128xf32, #tpu.memory_space<vmem>>, vector<64x128xf32>,
    return
  }
  func.func @transform_0(%arg0: i32) -> (i32, i32) {
    %c0_i32 = arith.constant 0 : i32
    %c0_i32_0 = arith.constant 0 : i32
    return %arg0, %c0_i32 : i32, i32
  }
  func.func @transform_1(%arg0: i32) -> (i32, i32) {
    %c0_i32 = arith.constant 0 : i32
    %c0_i32_0 = arith.constant 0 : i32
    %c0_i32_1 = arith.constant 0 : i32
    return %c0_i32, %c0_i32_0 : i32, i32
  }
  func.func @transform_2(%arg0: i32) -> (i32, i32) {
    %c0_i32 = arith.constant 0 : i32
    %c0_i32_0 = arith.constant 0 : i32
    %c0_i32_1 = arith.constant 0 : i32
    return %c0_i32, %c0_i32_0 : i32, i32
  }
  func.func @transform_3(%arg0: i32) -> (i32, i32) {
    %c0_i32 = arith.constant 0 : i32
    %c0_i32_0 = arith.constant 0 : i32
    %c0_i32_1 = arith.constant 0 : i32
    return %c0_i32, %c0_i32_0 : i32, i32
  }
  func.func @transform_4(%arg0: i32) -> (i32, i32) {
    %c0_i32 = arith.constant 0 : i32
    %c0_i32_0 = arith.constant 0 : i32
    %c0_i32_1 = arith.constant 0 : i32
    return %c0_i32, %c0_i32_0 : i32, i32
  }
  func.func @transform_5(%arg0: i32) -> (i32, i32) {
    %c0_i32 = arith.constant 0 : i32
    %c0_i32_0 = arith.constant 0 : i32
    %c0_i32_1 = arith.constant 0 : i32
    return %c0_i32, %c0_i32_0 : i32, i32
  }
  func.func @transform_6(%arg0: i32) -> (i32, i32) {
    %c0_i32 = arith.constant 0 : i32
    %c0_i32_0 = arith.constant 0 : i32
    %c0_i32_1 = arith.constant 0 : i32
    return %c0_i32, %c0_i32_0 : i32, i32
  }
  func.func @transform_7(%arg0: i32) -> (i32, i32) {
    %c0_i32 = arith.constant 0 : i32
    %c0_i32_0 = arith.constant 0 : i32
    return %arg0, %c0_i32 : i32, i32
  }
}

</mosaic_0001>

<bundles_post_ra>
// kernel: mlp_forward.1
= control target key start
LH: loop header
LB: loop body
LE: loop exit
PB: predicated region body
PF: predicated region fallthrough
CT: control target
= control target key end

     0   :  { %vm67_vm0 = vcmask 1043456   ;;  %vm42_vm1 = vcmask 31744   ;;  %s899_s1 = inlined_call_operand.vmem [shape: f32[4,128], index: 1, kind: input, shape index: {}]   ;;  %s900_s0 = inlined_call_operand.vmem [shape: f32[64,4], index: 0, kind: input, shape index: {}]   ;;  %s901_s3 = inlined_call_operand.vmem [shape: f32[128,128], index: 3, kind: input, shape index: {}]   ;;  %s902_s5 = inlined_call_operand.vmem [shape: f32[128,128], index: 5, kind: input, shape index: {}]   ;;  %s903_s2 = inlined_call_operand.vmem [shape: f32[1,128], index: 2, kind: input, shape index: {}]   ;;  %s904_s4 = inlined_call_operand.vmem [shape: f32[1,128], index: 4, kind: input, shape index: {}]   ;;  %s905_s6 = inlined_call_operand.vmem [shape: f32[1,128], index: 6, kind: input, shape index: {}]   ;;  %s906_s7 = inlined_call_operand.vmem [shape: f32[64,128], index: 7, kind: output, shape index: {}]  }
   0x1   :  { %v34_v0 = vld [vmem:[%s899_s1] sm:$0xf]  ;;  %v27_v2 = vld [vmem:[%s900_s0 + $0x8] sm:$0xff]  ;;  %v28_v3 = vld [vmem:[%s900_s0 + $0x10] sm:$0xff] }
   0x2   :  { %v26_v1 = vld [vmem:[%s900_s0] sm:$0xff]  ;;  %529 = vmatprep.subr.msk.mxu0 %vm67_vm0, %v34_v0  ;;  %v185_v5 = vld [vmem:[%s901_s3 + $0x8] sm:$0xff]  ;;  %v186_v6 = vld [vmem:[%s901_s3 + $0x10] sm:$0xff] }
   0x3   :  { %531 = vmatprep.mubr.msk.f32.mxu0 %vm42_vm1, %v26_v1  ;;  %530 = vmatpush3.msk.msra.mxu0 %vm67_vm0, %v34_v0  ;;  %v184_v4 = vld [vmem:[%s901_s3] sm:$0xff]  ;;  %v29_v7 = vld [vmem:[%s900_s0 + $0x18] sm:$0xff]  ;;  %v189_v13 = vld [vmem:[%s901_s3 + $0x28] sm:$0xff] }
   0x4   :  { %532 = vmatmul.mubr.msk.f32.vlgmr.msra.gmra.mrb[0].mxu0 %vm42_vm1, %v27_v2  ;;  %v631_v8 = vpack.c.bf16 %v185_v5, %v184_v4  ;;  %v187_v9 = vld [vmem:[%s901_s3 + $0x18] sm:$0xff]  ;;  %v30_v10 = vld [vmem:[%s900_s0 + $0x20] sm:$0xff]  ;;  %v31_v14 = vld [vmem:[%s900_s0 + $0x28] sm:$0xff] }
   0x5   :  { %534 = vmatprep.mubr.msk.f32.mxu0 %vm42_vm1, %v28_v3  ;;  %v635_v11 = vpack.c.bf16 %v187_v9, %v186_v6  ;;  %v188_v12 = vld [vmem:[%s901_s3 + $0x20] sm:$0xff]  ;;  %v32_v16 = vld [vmem:[%s900_s0 + $0x30] sm:$0xff]  ;;  %v191_v18 = vld [vmem:[%s901_s3 + $0x38] sm:$0xff] }
   0x6   :  { %632 = vmatprep.subr.bf16.mxu1 %v631_v8  ;;  %v639_v15 = vpack.c.bf16 %v189_v13, %v188_v12  ;;  %v190_v17 = vld [vmem:[%s901_s3 + $0x30] sm:$0xff]  ;;  %v33_v19 = vld [vmem:[%s900_s0 + $0x38] sm:$0xff]  ;;  %v192_v21 = vld [vmem:[%s901_s3 + $0x40] sm:$0xff] }
   0x7   :  { %634 = vmatpush3.bf16.msra.mxu1 %v631_v8  ;;  %v643_v20 = vpack.c.bf16 %v191_v18, %v190_v17  ;;  %v193_v22 = vld [vmem:[%s901_s3 + $0x48] sm:$0xff]  ;;  %v194_v24 = vld [vmem:[%s901_s3 + $0x50] sm:$0xff]  ;;  %v195_v25 = vld [vmem:[%s901_s3 + $0x58] sm:$0xff] }
   0x8   :  { %535 = vmatmul.mubr.msk.f32.gmra.mrb[2].mxu0 %vm42_vm1, %v29_v7  ;;  %636 = vmatprep.subr.bf16.mxu1 %v635_v11  ;;  %v647_v23 = vpack.c.bf16 %v193_v22, %v192_v21  ;;  %v651_v26 = vpack.c.bf16 %v195_v25, %v194_v24  ;;  %v196_v27 = vld [vmem:[%s901_s3 + $0x60] sm:$0xff]  ;;  %v197_v28 = vld [vmem:[%s901_s3 + $0x68] sm:$0xff]  ;;  %v198_v30 = vld [vmem:[%s901_s3 + $0x70] sm:$0xff] }
   0x9   :  { %537 = vmatprep.mubr.msk.f32.mxu0 %vm42_vm1, %v30_v10  ;;  %v655_v29 = vpack.c.bf16 %v197_v28, %v196_v27  ;;  %v199_v31 = vld [vmem:[%s901_s3 + $0x78] sm:$0xff]  ;;  %v320_v33 = vld [vmem:[%s902_s5] sm:$0xff]  ;;  %v321_v34 = vld [vmem:[%s902_s5 + $0x8] sm:$0xff] }
   0xa   :  { %v659_v32 = vpack.c.bf16 %v199_v31, %v198_v30  ;;  %v322_v35 = vld [vmem:[%s902_s5 + $0x10] sm:$0xff]  ;;  %v663_v36 = vpack.c.bf16 %v321_v34, %v320_v33  ;;  %v323_v37 = vld [vmem:[%s902_s5 + $0x18] sm:$0xff]  ;;  %v324_v39 = vld [vmem:[%s902_s5 + $0x20] sm:$0xff] }
   0xb   :  { %638 = vmatpush3.bf16.msra.mxu1 %v635_v11  ;;  %v667_v38 = vpack.c.bf16 %v323_v37, %v322_v35  ;;  %v325_v40 = vld [vmem:[%s902_s5 + $0x28] sm:$0xff]  ;;  %v326_v42 = vld [vmem:[%s902_s5 + $0x30] sm:$0xff]  ;;  %v327_v43 = vld [vmem:[%s902_s5 + $0x38] sm:$0xff] }
   0xc   :  { %538 = vmatmul.mubr.msk.f32.gmra.mrb[4].mxu0 %vm42_vm1, %v31_v14  ;;  %640 = vmatprep.subr.bf16.mxu1 %v639_v15  ;;  %v671_v41 = vpack.c.bf16 %v325_v40, %v324_v39  ;;  %v675_v44 = vpack.c.bf16 %v327_v43, %v326_v42  ;;  %v328_v45 = vld [vmem:[%s902_s5 + $0x40] sm:$0xff]  ;;  %v329_v46 = vld [vmem:[%s902_s5 + $0x48] sm:$0xff]  ;;  %v330_v48 = vld [vmem:[%s902_s5 + $0x50] sm:$0xff] }
   0xd   :  { %540 = vmatprep.mubr.msk.f32.mxu0 %vm42_vm1, %v32_v16  ;;  %664 = vmatprep.subr.bf16.mxu0 %v663_v36  ;;  %v679_v47 = vpack.c.bf16 %v329_v46, %v328_v45  ;;  %v331_v49 = vld [vmem:[%s902_s5 + $0x58] sm:$0xff]  ;;  %v332_v51 = vld [vmem:[%s902_s5 + $0x60] sm:$0xff]  ;;  %v333_v52 = vld [vmem:[%s902_s5 + $0x68] sm:$0xff] }
   0xe   :  { %666 = vmatpush3.bf16.msra.mxu0 %v663_v36  ;;  %v683_v50 = vpack.c.bf16 %v331_v49, %v330_v48  ;;  %v687_v53 = vpack.c.bf16 %v333_v52, %v332_v51  ;;  %v460_v54 = vld [vmem:[%s903_s2] ss:$0 sm:$0xff]  ;;  %v335_v16 = vld [vmem:[%s902_s5 + $0x78] sm:$0xff] }
   0xf   :  { %642 = vmatpush3.bf16.msra.mxu1 %v639_v15  ;;  %668 = vmatprep.subr.bf16.mxu0 %v667_v38  ;;  %v334_v15 = vld [vmem:[%s902_s5 + $0x70] sm:$0xff]  ;;  %v470_v18 = vld [vmem:[%s904_s4] ss:$0 sm:$0xff] }
  0x10   :  { %541 = vmatmul.mubr.msk.f32.gmra.mrb[6].mxu0 %vm42_vm1, %v33_v19  ;;  %644 = vmatprep.subr.bf16.mxu1 %v643_v20  ;;  %v691_v17 = vpack.c.bf16 %v335_v16, %v334_v15  ;;  %v471_v43 = vld [vmem:[%s905_s6] ss:$0 sm:$0xff] }
  0x12   :  { %670 = vmatpush3.bf16.msra.mxu0 %v667_v38 }
  0x13   :  { %646 = vmatpush3.bf16.msra.mxu1 %v643_v20  ;;  %672 = vmatprep.subr.bf16.mxu0 %v671_v41 }
  0x14   :  { %648 = vmatprep.subr.bf16.mxu1 %v647_v23 }
  0x16   :  { %674 = vmatpush3.bf16.msra.mxu0 %v671_v41 }
  0x17   :  { %650 = vmatpush3.bf16.msra.mxu1 %v647_v23  ;;  %676 = vmatprep.subr.bf16.mxu0 %v675_v44 }
  0x18   :  { %652 = vmatprep.subr.bf16.mxu1 %v651_v26 }
  0x1a   :  { %678 = vmatpush3.bf16.msra.mxu0 %v675_v44 }
  0x1b   :  { %654 = vmatpush3.bf16.msra.mxu1 %v651_v26  ;;  %680 = vmatprep.subr.bf16.mxu0 %v679_v47 }
  0x1c   :  { %656 = vmatprep.subr.bf16.mxu1 %v655_v29 }
  0x1e   :  { %682 = vmatpush3.bf16.msra.mxu0 %v679_v47 }
  0x1f   :  { %658 = vmatpush3.bf16.msra.mxu1 %v655_v29  ;;  %684 = vmatprep.subr.bf16.mxu0 %v683_v50 }
  0x20   :  { %660 = vmatprep.subr.bf16.mxu1 %v659_v32 }
  0x22   :  { %686 = vmatpush3.bf16.msra.mxu0 %v683_v50 }
  0x23   :  { %662 = vmatpush3.bf16.msra.mxu1 %v659_v32  ;;  %688 = vmatprep.subr.bf16.mxu0 %v687_v53 }
  0x26   :  { %690 = vmatpush3.bf16.msra.mxu0 %v687_v53 }
  0x27   :  { %692 = vmatprep.subr.bf16.mxu0 %v691_v17 }
  0x2a   :  { %694 = vmatpush3.bf16.msra.mxu0 %v691_v17 }
  0xd7   :  { %v533_v55 = vpop.f32.mrb[0].mxu0 }
  0xd8   :  { %v143_v56 = vadd.f32 %v533_v55, %v460_v54  ;;  %v137_v57 = vpop.f32.mrb[1].mxu0 }
  0xd9   :  { %v138_v58 = vadd.f32 %v460_v54, %v137_v57 }
  0xda   :  { %v177_v61 = vmax.f32 %v143_v56, 0.0 }
  0xdb   :  { %v536_v59 = vpop.f32.mrb[2].mxu0  ;;  %v176_v60 = vmax.f32 %v138_v58, 0.0 }
  0xdc   :  { %v153_v62 = vadd.f32 %v536_v59, %v460_v54  ;;  %v147_v63 = vpop.f32.mrb[3].mxu0 }
  0xdd   :  { %v148_v0 = vadd.f32 %v460_v54, %v147_v63  ;;  %575 = vmatprep.mubr.f32.mxu1 %v176_v60 }
  0xde   :  { %576 = vmatmul.mubr.f32.vlgmr.msra.gmra.mrb[0].mxu1 %v177_v61  ;;  %v179_v3 = vmax.f32 %v153_v62, 0.0 }
  0xdf   :  { %v178_v1 = vmax.f32 %v148_v0, 0.0  ;;  %v539_v2 = vpop.f32.mrb[4].mxu0 }
  0xe0   :  { %v163_v4 = vadd.f32 %v539_v2, %v460_v54  ;;  %v157_v5 = vpop.f32.mrb[5].mxu0 }
  0xe1   :  { %v158_v6 = vadd.f32 %v460_v54, %v157_v5  ;;  %578 = vmatprep.mubr.f32.mxu1 %v178_v1 }
  0xe2   :  { %579 = vmatmul.mubr.f32.gmra.mrb[2].mxu1 %v179_v3  ;;  %v181_v9 = vmax.f32 %v163_v4, 0.0 }
  0xe3   :  { %v180_v7 = vmax.f32 %v158_v6, 0.0  ;;  %v542_v8 = vpop.f32.mrb[6].mxu0 }
  0xe4   :  { %v173_v10 = vadd.f32 %v542_v8, %v460_v54  ;;  %v167_v11 = vpop.f32.mrb[7].mxu0 }
  0xe5   :  { %v168_v12 = vadd.f32 %v460_v54, %v167_v11  ;;  %581 = vmatprep.mubr.f32.mxu1 %v180_v7 }
  0xe6   :  { %582 = vmatmul.mubr.f32.gmra.mrb[4].mxu1 %v181_v9  ;;  %v183_v14 = vmax.f32 %v173_v10, 0.0 }
  0xe7   :  { %v182_v13 = vmax.f32 %v168_v12, 0.0 }
  0xe9   :  { %584 = vmatprep.mubr.f32.mxu1 %v182_v13 }
  0xea   :  { %585 = vmatmul.mubr.f32.gmra.mrb[6].mxu1 %v183_v14 }
 0x1b1   :  { %v577_v19 = vpop.f32.mrb[0].mxu1 }
 0x1b2   :  { %v279_v20 = vadd.f32 %v577_v19, %v470_v18  ;;  %v273_v21 = vpop.f32.mrb[1].mxu1 }
 0x1b3   :  { %v274_v22 = vadd.f32 %v470_v18, %v273_v21 }
 0x1b4   :  { %v313_v25 = vmax.f32 %v279_v20, 0.0 }
 0x1b5   :  { %v312_v23 = vmax.f32 %v274_v22, 0.0  ;;  %v580_v24 = vpop.f32.mrb[2].mxu1 }
 0x1b6   :  { %v289_v26 = vadd.f32 %v580_v24, %v470_v18  ;;  %v283_v27 = vpop.f32.mrb[3].mxu1 }
 0x1b7   :  { %v284_v28 = vadd.f32 %v470_v18, %v283_v27  ;;  %619 = vmatprep.mubr.f32.mxu0 %v312_v23 }
 0x1b8   :  { %620 = vmatmul.mubr.f32.vlgmr.msra.gmra.mrb[8].mxu0 %v313_v25  ;;  %v315_v31 = vmax.f32 %v289_v26, 0.0 }
 0x1b9   :  { %v314_v29 = vmax.f32 %v284_v28, 0.0  ;;  %v583_v30 = vpop.f32.mrb[4].mxu1 }
 0x1ba   :  { %v299_v32 = vadd.f32 %v583_v30, %v470_v18  ;;  %v293_v33 = vpop.f32.mrb[5].mxu1 }
 0x1bb   :  { %v294_v34 = vadd.f32 %v470_v18, %v293_v33  ;;  %622 = vmatprep.mubr.f32.mxu0 %v314_v29 }
 0x1bc   :  { %623 = vmatmul.mubr.f32.gmra.mrb[10].mxu0 %v315_v31  ;;  %v317_v37 = vmax.f32 %v299_v32, 0.0 }
 0x1bd   :  { %v316_v35 = vmax.f32 %v294_v34, 0.0  ;;  %v586_v36 = vpop.f32.mrb[6].mxu1 }
 0x1be   :  { %v309_v38 = vadd.f32 %v586_v36, %v470_v18  ;;  %v303_v39 = vpop.f32.mrb[7].mxu1 }
 0x1bf   :  { %v304_v40 = vadd.f32 %v470_v18, %v303_v39  ;;  %625 = vmatprep.mubr.f32.mxu0 %v316_v35 }
 0x1c0   :  { %626 = vmatmul.mubr.f32.gmra.mrb[12].mxu0 %v317_v37  ;;  %v319_v42 = vmax.f32 %v309_v38, 0.0 }
 0x1c1   :  { %v318_v41 = vmax.f32 %v304_v40, 0.0 }
 0x1c3   :  { %628 = vmatprep.mubr.f32.mxu0 %v318_v41 }
 0x1c4   :  { %629 = vmatmul.mubr.f32.gmra.mrb[14].mxu0 %v319_v42 }
 0x28b   :  { %v621_v44 = vpop.f32.mrb[8].mxu0 }
 0x28c   :  { %v415_v45 = vadd.f32 %v621_v44, %v471_v43  ;;  %v409_v46 = vpop.f32.mrb[9].mxu0 }
 0x28d   :  { %v410_v47 = vadd.f32 %v471_v43, %v409_v46 }
 0x28e   :  { %449 = vst [vmem:[%s906_s7 + $0x8] sm:$0xff] %v415_v45 }
 0x28f   :  { %448 = vst [vmem:[%s906_s7] sm:$0xff] %v410_v47  ;;  %v624_v48 = vpop.f32.mrb[10].mxu0 }
 0x290   :  { %v425_v49 = vadd.f32 %v624_v48, %v471_v43  ;;  %v419_v50 = vpop.f32.mrb[11].mxu0 }
 0x291   :  { %v420_v51 = vadd.f32 %v471_v43, %v419_v50 }
 0x292   :  { %451 = vst [vmem:[%s906_s7 + $0x18] sm:$0xff] %v425_v49 }
 0x293   :  { %450 = vst [vmem:[%s906_s7 + $0x10] sm:$0xff] %v420_v51  ;;  %v627_v52 = vpop.f32.mrb[12].mxu0 }
 0x294   :  { %v435_v53 = vadd.f32 %v627_v52, %v471_v43  ;;  %v429_v54 = vpop.f32.mrb[13].mxu0 }
 0x295   :  { %v430_v55 = vadd.f32 %v471_v43, %v429_v54 }
 0x296   :  { %453 = vst [vmem:[%s906_s7 + $0x28] sm:$0xff] %v435_v53 }
 0x297   :  { %452 = vst [vmem:[%s906_s7 + $0x20] sm:$0xff] %v430_v55  ;;  %v630_v56 = vpop.f32.mrb[14].mxu0 }
 0x298   :  { %v445_v57 = vadd.f32 %v630_v56, %v471_v43  ;;  %v439_v58 = vpop.f32.mrb[15].mxu0 }
 0x299   :  { %v440_v59 = vadd.f32 %v471_v43, %v439_v58 }
 0x29a   :  { %455 = vst [vmem:[%s906_s7 + $0x38] sm:$0xff] %v445_v57 }
 0x29b   :  { %454 = vst [vmem:[%s906_s7 + $0x30] sm:$0xff] %v440_v59 }

</bundles_post_ra>
